<compile_context>
chip_gen: v7x
topology: tpu7x:2x2x1
jax: 0.10.0
libtpu: 0.0.40
codegen_flags: <defaults>
</compile_context>

<pallas_src>
import functools

import jax
import jax.numpy as jnp
from jax.experimental import pallas as pl
from jax.experimental.pallas import tpu as pltpu

LANE = 128
SUBLANE_BF16 = 16   # bf16 sublane packing -> M tiles should be multiples of 16
EPS = 1e-5
N_SPLIT = 2         # leading 'parallel' grid axis (TensorCore split on v7x)
TM_MAX = 256        # rows per grid step for large batches


def _round_up(x, m):
    return (x + m - 1) // m * m


def _cdiv(a, b):
    return -(-a // b)


def _choose_tiling(n, n_split=N_SPLIT, tm_max=TM_MAX):
    """Batch tiling: TM multiple of 16, ~256 rows/step for large N."""
    tm = min(tm_max, _round_up(max(1, _cdiv(n, n_split)), SUBLANE_BF16))
    tpc = max(1, _cdiv(n, tm * n_split))          # batch tiles per core
    n_pad = n_split * tpc * tm
    return tm, tpc, n_pad


def _vmem_limit_bytes(tm, in_pad, h_pad, out_pad, n_split):
    """Generation-aware scoped-VMEM request (~80% of physical per-core VMEM)."""
    widest = max(in_pad, h_pad, out_pad)
    weights = max(in_pad, h_pad) * widest * 2                 # resident bf16 weight
    tiles = 2 * 2 * tm * widest * 4                           # double-buffered in/out tiles
    small = (n_split * 2 * h_pad + 2 * 3 * h_pad + out_pad) * 4
    live = 6 * tm * h_pad * 4                                 # live f32 intermediates
    need = 2 * weights + tiles + small + live + (2 << 20)
    try:
        cap = int(pltpu.get_tpu_info().vmem_capacity_bytes)
    except Exception:
        cap = 64 << 20                                        # v7x per-TC floor
    return int(min(0.8 * cap, max(need, 16 << 20)))


def _row_mask(tm, tpc, n_true):
    """[1, TM] f32 validity row for the current grid step (1.0 = real batch row)."""
    row0 = (pl.program_id(0) * tpc + pl.program_id(1)) * tm
    rows = jax.lax.broadcasted_iota(jnp.int32, (1, tm), 1) + row0
    return (rows < n_true).astype(jnp.float32)


def _accum_stats(stats_ref, h_f32, ones_masked):
    """Accumulate per-feature [sum; sumsq] with MXU dots (XLU stays free)."""
    s = jnp.dot(ones_masked, h_f32, preferred_element_type=jnp.float32)
    sq = jnp.dot(ones_masked, h_f32 * h_f32, preferred_element_type=jnp.float32)
    stats_ref[...] = stats_ref[...] + jnp.concatenate([s, sq], axis=0)


def _bn_coeffs(stats_ref, bgb_prev_ref, n_true, n_split, eps):
    """Fold BN into one FMA: x_norm = h*scale + shift (var = E[h^2]-mean^2)."""
    st = stats_ref[0]
    for c in range(1, n_split):
        st = st + stats_ref[c]
    inv_n = jnp.float32(1.0 / n_true)
    mean = st[0:1, :] * inv_n
    var = jnp.maximum(st[1:2, :] * inv_n - mean * mean, 0.0)
    scale = bgb_prev_ref[1:2, :] * jax.lax.rsqrt(var + eps)   # gamma * rsqrt(var+eps)
    shift = bgb_prev_ref[2:3, :] - mean * scale               # beta - mean*scale
    return scale, shift


def _make_first_kernel(tm, tpc, n_true, eps):
    def kernel(x_ref, wt_ref, bgb_ref, h_ref, stats_ref):
        @pl.when(pl.program_id(1) == 0)
        def _():
            stats_ref[...] = jnp.zeros_like(stats_ref)

        h = jnp.dot(x_ref[...].astype(jnp.bfloat16), wt_ref[...],
                    preferred_element_type=jnp.float32)
        h = jnp.maximum(h + bgb_ref[0:1, :], 0.0)            # bias + ReLU

        _accum_stats(stats_ref, h, _row_mask(tm, tpc, n_true))
        h_ref[...] = h.astype(jnp.bfloat16)
    return kernel


def _make_mid_kernel(tm, tpc, n_true, n_split, eps):
    def kernel(h_in_ref, stats_in_ref, bgb_prev_ref, wt_ref, bgb_ref,
               h_ref, stats_ref):
        @pl.when(pl.program_id(1) == 0)
        def _():
            stats_ref[...] = jnp.zeros_like(stats_ref)

        scale, shift = _bn_coeffs(stats_in_ref, bgb_prev_ref, n_true, n_split, eps)
        a = h_in_ref[...].astype(jnp.float32) * scale + shift   # BN(prev), single FMA pass

        h = jnp.dot(a.astype(jnp.bfloat16), wt_ref[...],
                    preferred_element_type=jnp.float32)
        h = jnp.maximum(h + bgb_ref[0:1, :], 0.0)

        _accum_stats(stats_ref, h, _row_mask(tm, tpc, n_true))
        h_ref[...] = h.astype(jnp.bfloat16)
    return kernel


def _make_last_kernel(n_true, n_split, eps):
    def kernel(h_in_ref, stats_in_ref, bgb_prev_ref, wt_ref, b_ref, o_ref):
        scale, shift = _bn_coeffs(stats_in_ref, bgb_prev_ref, n_true, n_split, eps)
        a = h_in_ref[...].astype(jnp.float32) * scale + shift
        out = jnp.dot(a.astype(jnp.bfloat16), wt_ref[...],
                      preferred_element_type=jnp.float32) + b_ref[0:1, :]
        o_ref[...] = jnp.exp(out).astype(o_ref.dtype)         # lane-dense slab
    return kernel


def prepare_params(params, nb_layers, input_dim, nb_units, output_dim):
    """One-time glue: transpose, pad to lane width, pack bias/gamma/beta, cast bf16."""
    in_pad = _round_up(input_dim, LANE)
    # TODO(synk): pad hidden width to 256 for 128 < nb_units <= 256 on v6e/v7x
    # (256-wide MXU); 128-multiples are already the floor for nb_units<=128 / v5e.
    h_pad = _round_up(nb_units, LANE)
    out_pad = _round_up(output_dim, LANE)

    flat = []
    in_dim, in_dim_pad = input_dim, in_pad
    for i in range(nb_layers - 1):
        p = params[i]
        wt = jnp.zeros((in_dim_pad, h_pad), jnp.float32)
        wt = wt.at[:in_dim, :nb_units].set(p["w"].T)
        bgb = jnp.zeros((3, h_pad), jnp.float32)
        bgb = bgb.at[0, :nb_units].set(p["b"])
        bgb = bgb.at[1, :nb_units].set(p["gamma"])  # pad gamma/beta = 0 -> pad lanes stay 0
        bgb = bgb.at[2, :nb_units].set(p["beta"])
        flat += [wt.astype(jnp.bfloat16), bgb]
        in_dim, in_dim_pad = nb_units, h_pad

    p = params[-1]
    wt = jnp.zeros((h_pad, out_pad), jnp.float32)
    wt = wt.at[:nb_units, :output_dim].set(p["w"].T)
    b = jnp.zeros((1, out_pad), jnp.float32).at[0, :output_dim].set(p["b"])
    flat += [wt.astype(jnp.bfloat16), b]
    return flat, in_pad, h_pad, out_pad


def dnn_pseudo_p_forward(x, flat_params, *, nb_layers, input_dim, output_dim,
                         in_pad, h_pad, out_pad, n_split=N_SPLIT, eps=EPS):
    n = x.shape[0]
    n_hidden = nb_layers - 1
    tm, tpc, n_pad = _choose_tiling(n, n_split)
    grid = (n_split, tpc)

    # Zero-pad batch rows (excluded from BN stats by the in-kernel row mask)
    # and input columns (lane-aligned first contraction).
    x_p = jnp.zeros((n_pad, in_pad), jnp.float32).at[:n, :input_dim].set(
        x.astype(jnp.float32))

    vmem = _vmem_limit_bytes(tm, in_pad, h_pad, out_pad, n_split)
    cp_acc = pltpu.CompilerParams(
        dimension_semantics=("parallel", "arbitrary"), vmem_limit_bytes=vmem)
    cp_par = pltpu.CompilerParams(
        dimension_semantics=("parallel", "parallel"), vmem_limit_bytes=vmem)

    def row_spec(width):
        return pl.BlockSpec((tm, width), lambda c, i: (c * tpc + i, 0))

    def const_spec(shape):
        nd = len(shape)
        return pl.BlockSpec(shape, lambda c, i, _nd=nd: (0,) * _nd)

    stats_out_spec = pl.BlockSpec((None, 2, h_pad), lambda c, i: (c, 0, 0))
    stats_in_spec = const_spec((n_split, 2, h_pad))

    h_shape = jax.ShapeDtypeStruct((n_pad, h_pad), jnp.bfloat16)
    stats_shape = jax.ShapeDtypeStruct((n_split, 2, h_pad), jnp.float32)

    # ---- layer 0: Linear + ReLU, accumulate per-feature sum/sumsq ----
    h, stats = pl.pallas_call(
        _make_first_kernel(tm, tpc, n, eps),
        grid=grid,
        in_specs=[row_spec(in_pad), const_spec((in_pad, h_pad)),
                  const_spec((3, h_pad))],
        out_specs=(row_spec(h_pad), stats_out_spec),
        out_shape=(h_shape, stats_shape),
        compiler_params=cp_acc,
    )(x_p, flat_params[0], flat_params[1])

    # ---- hidden layers 1..n_hidden-1: BN(prev) + Linear + ReLU + stats ----
    for li in range(1, n_hidden):
        h, stats = pl.pallas_call(
            _make_mid_kernel(tm, tpc, n, n_split, eps),
            grid=grid,
            in_specs=[row_spec(h_pad), stats_in_spec, const_spec((3, h_pad)),
                      const_spec((h_pad, h_pad)), const_spec((3, h_pad))],
            out_specs=(row_spec(h_pad), stats_out_spec),
            out_shape=(h_shape, stats_shape),
            compiler_params=cp_acc,
        )(h, stats, flat_params[2 * li - 1], flat_params[2 * li],
          flat_params[2 * li + 1])

    # ---- final layer: BN(prev) + Linear + exp ----
    # Tiny writebacks keep the f32 lane-dense slab; large N switches to bf16
    # to halve the pure-HBM writeback tax (sliced / upcast outside the kernel).
    out_dtype = jnp.float32 if n_pad * out_pad * 4 <= (1 << 20) else jnp.bfloat16
    out = pl.pallas_call(
        _make_last_kernel(n, n_split, eps),
        grid=grid,
        in_specs=[row_spec(h_pad), stats_in_spec, const_spec((3, h_pad)),
                  const_spec((h_pad, out_pad)), const_spec((1, out_pad))],
        out_specs=row_spec(out_pad),
        out_shape=jax.ShapeDtypeStruct((n_pad, out_pad), out_dtype),
        compiler_params=cp_par,
    )(h, stats, flat_params[2 * n_hidden - 1], flat_params[2 * n_hidden],
      flat_params[2 * n_hidden + 1])

    return out[:n, :output_dim].astype(jnp.float32)


def init_params(key, nb_layers, nb_units, input_dim, output_dim):
    """Deterministic synthetic init (PyTorch-like uniform fan-in scaling)."""
    params = []
    dims_in = [input_dim] + [nb_units] * (nb_layers - 1)
    dims_out = [nb_units] * (nb_layers - 1) + [output_dim]
    for i in range(nb_layers):
        key, kw, kb = jax.random.split(key, 3)
        bound = 1.0 / jnp.sqrt(dims_in[i])
        w = jax.random.uniform(kw, (dims_out[i], dims_in[i]), jnp.float32, -bound, bound)
        b = jax.random.uniform(kb, (dims_out[i],), jnp.float32, -bound, bound)
        if i < nb_layers - 1:
            params.append({
                "w": w, "b": b,
                "gamma": jnp.ones((dims_out[i],), jnp.float32),
                "beta": jnp.zeros((dims_out[i],), jnp.float32),
            })
        else:
            params.append({"w": w, "b": b})
    return params


def reference_forward(x, params, nb_layers, eps=EPS):
    """Pure-JAX f32 reference (original module semantics, training-mode BN)."""
    h = x
    for i in range(nb_layers - 1):
        p = params[i]
        h = jnp.maximum(h @ p["w"].T + p["b"], 0.0)
        mean = jnp.mean(h, axis=0, keepdims=True)
        var = jnp.mean((h - mean) ** 2, axis=0, keepdims=True)
        h = (h - mean) / jnp.sqrt(var + eps) * p["gamma"] + p["beta"]
    p = params[-1]
    return jnp.exp(h @ p["w"].T + p["b"])


if __name__ == "__main__":
    nb_layers = 3
    nb_units = 32
    input_dim = 18
    output_dim = 1
    batch = 8

    key = jax.random.PRNGKey(0)
    key, kx = jax.random.split(key)
    x = jax.random.normal(kx, (batch, input_dim), jnp.float32)

    params = init_params(jax.random.PRNGKey(42), nb_layers, nb_units, input_dim,
                         output_dim)
    flat_params, in_pad, h_pad, out_pad = prepare_params(
        params, nb_layers, input_dim, nb_units, output_dim)

    fwd = jax.jit(functools.partial(
        dnn_pseudo_p_forward, nb_layers=nb_layers, input_dim=input_dim,
        output_dim=output_dim, in_pad=in_pad, h_pad=h_pad, out_pad=out_pad))

    out = jax.block_until_ready(fwd(x, flat_params))

    ref = reference_forward(x, params, nb_layers)
    assert out.shape == (batch, output_dim)
    # bf16 MXU operands / bf16 inter-layer staging (f32 accumulation, f32 BN+exp)
    # -> loose tolerance vs. the pure-f32 reference.
    assert jnp.allclose(out, ref, rtol=5e-2, atol=5e-2), (out, ref)

    print("KERNEL_OK")
</pallas_src>

<mosaic_0001>
module attributes {stable_mosaic.version = 11 : i64} {
  func.func @kernel(%arg0: i32, %arg1: i32, %arg2: memref<16x128xbf16, #tpu.memory_space<vmem>>, %arg3: memref<2x2x128xf32, #tpu.memory_space<vmem>>, %arg4: memref<3x128xf32, #tpu.memory_space<vmem>>, %arg5: memref<128x128xbf16, #tpu.memory_space<vmem>>, %arg6: memref<1x128xf32, #tpu.memory_space<vmem>>, %arg7: memref<16x128xf32, #tpu.memory_space<vmem>>) attributes {dimension_semantics = [#tpu.dimension_semantics<parallel>, #tpu.dimension_semantics<parallel>], iteration_bounds = array<i64: 2, 1>, scalar_prefetch = 0 : i64, scratch_operands = 0 : i64, tpu.core_type = #tpu.core_type<tc>, window_params = [{transform_indices = @transform_0, window_bounds = array<i64: 16, 128>}, {pipeline_mode = #tpu.pipeline_mode<synchronous>, transform_indices = @transform_1, window_bounds = array<i64: 2, 2, 128>}, {pipeline_mode = #tpu.pipeline_mode<synchronous>, transform_indices = @transform_2, window_bounds = array<i64: 3, 128>}, {pipeline_mode = #tpu.pipeline_mode<synchronous>, transform_indices = @transform_3, window_bounds = array<i64: 128, 128>}, {pipeline_mode = #tpu.pipeline_mode<synchronous>, transform_indices = @transform_4, window_bounds = array<i64: 1, 128>}, {transform_indices = @transform_5, window_bounds = array<i64: 16, 128>}]} {
    %c0 = arith.constant 0 : index
    %c0_0 = arith.constant 0 : index
    %c0_1 = arith.constant 0 : index
    %0 = vector.load %arg3[%c0, %c0_0, %c0_1] : memref<2x2x128xf32, #tpu.memory_space<vmem>>, vector<1x2x128xf32>
    %1 = vector.shape_cast %0 : vector<1x2x128xf32> to vector<2x128xf32>
    %c1 = arith.constant 1 : index
    %c0_2 = arith.constant 0 : index
    %c0_3 = arith.constant 0 : index
    %2 = vector.load %arg3[%c1, %c0_2, %c0_3] : memref<2x2x128xf32, #tpu.memory_space<vmem>>, vector<1x2x128xf32>
    %3 = vector.shape_cast %2 : vector<1x2x128xf32> to vector<2x128xf32>
    %4 = arith.addf %1, %3 : vector<2x128xf32>
    %5 = vector.extract_strided_slice %4 {offsets = [0, 0], sizes = [1, 128], strides = [1, 1]} : vector<2x128xf32> to vector<1x128xf32>
    %cst = arith.constant 1.250000e-01 : f32
    %6 = vector.broadcast %cst : f32 to vector<1x128xf32>
    %7 = arith.mulf %5, %6 : vector<1x128xf32>
    %8 = vector.extract_strided_slice %4 {offsets = [1, 0], sizes = [1, 128], strides = [1, 1]} : vector<2x128xf32> to vector<1x128xf32>
    %cst_4 = arith.constant 1.250000e-01 : f32
    %9 = vector.broadcast %cst_4 : f32 to vector<1x128xf32>
    %10 = arith.mulf %8, %9 : vector<1x128xf32>
    %11 = arith.mulf %7, %7 : vector<1x128xf32>
    %12 = arith.subf %10, %11 : vector<1x128xf32>
    %cst_5 = arith.constant 0.000000e+00 : f32
    %13 = vector.broadcast %cst_5 : f32 to vector<1x128xf32>
    %14 = arith.maximumf %12, %13 : vector<1x128xf32>
    %c1_6 = arith.constant 1 : index
    %c0_7 = arith.constant 0 : index
    %15 = vector.load %arg4[%c1_6, %c0_7] : memref<3x128xf32, #tpu.memory_space<vmem>>, vector<1x128xf32>
    %cst_8 = arith.constant 9.99999974E-6 : f32
    %16 = vector.broadcast %cst_8 : f32 to vector<1x128xf32>
    %17 = arith.addf %14, %16 : vector<1x128xf32>
    %18 = math.rsqrt %17 : vector<1x128xf32>
    %19 = arith.mulf %15, %18 : vector<1x128xf32>
    %c2 = arith.constant 2 : index
    %c0_9 = arith.constant 0 : index
    %20 = vector.load %arg4[%c2, %c0_9] : memref<3x128xf32, #tpu.memory_space<vmem>>, vector<1x128xf32>
    %21 = arith.mulf %7, %19 : vector<1x128xf32>
    %22 = arith.subf %20, %21 : vector<1x128xf32>
    %c0_10 = arith.constant 0 : index
    %c0_11 = arith.constant 0 : index
    %23 = vector.load %arg2[%c0_10, %c0_11] : memref<16x128xbf16, #tpu.memory_space<vmem>>, vector<16x128xbf16>
    %24 = arith.extf %23 : vector<16x128xbf16> to vector<16x128xf32>
    %25 = vector.broadcast %19 : vector<1x128xf32> to vector<16x128xf32>
    %26 = arith.mulf %24, %25 : vector<16x128xf32>
    %27 = vector.broadcast %22 : vector<1x128xf32> to vector<16x128xf32>
    %28 = arith.addf %26, %27 : vector<16x128xf32>
    %29 = arith.truncf %28 : vector<16x128xf32> to vector<16x128xbf16>
    %c0_12 = arith.constant 0 : index
    %c0_13 = arith.constant 0 : index
    %30 = vector.load %arg5[%c0_12, %c0_13] : memref<128x128xbf16, #tpu.memory_space<vmem>>, vector<128x128xbf16>
    %cst_14 = arith.constant dense<0.000000e+00> : vector<16x128xf32>
    %31 = tpu.matmul %29, %30, %cst_14 {dimension_numbers = #tpu.dot_dimension_numbers<[1], [0], [0], [1], [0, 0, 1, 1], [], []>} : vector<16x128xbf16>, vector<128x128xbf16>, vector<16x128xf32> -> vector<16x128xf32>
    %c0_15 = arith.constant 0 : index
    %c0_16 = arith.constant 0 : index
    %32 = vector.load %arg6[%c0_15, %c0_16] : memref<1x128xf32, #tpu.memory_space<vmem>>, vector<1x128xf32>
    %33 = vector.broadcast %32 : vector<1x128xf32> to vector<16x128xf32>
    %34 = arith.addf %31, %33 : vector<16x128xf32>
    %35 = math.exp %34 : vector<16x128xf32>
    %c0_17 = arith.constant 0 : index
    %c0_18 = arith.constant 0 : index
    %36 = vector.load %arg7[%c0_17, %c0_18] : memref<16x128xf32, #tpu.memory_space<vmem>>, vector<16x128xf32>
    tpu.vector_store %arg7[%c0_17, %c0_18], %35 {strides = array<i32>} : memref<16x128xf32, #tpu.memory_space<vmem>>, vector<16x128xf32>,
    return
  }
  func.func @transform_0(%arg0: i32, %arg1: i32) -> (i32, i32) {
    %c1_i32 = arith.constant 1 : i32
    %0 = arith.muli %arg0, %c1_i32 : i32
    %1 = arith.addi %0, %arg1 : i32
    %c0_i32 = arith.constant 0 : i32
    %c0_i32_0 = arith.constant 0 : i32
    return %1, %c0_i32 : i32, i32
  }
  func.func @transform_1(%arg0: i32, %arg1: i32) -> (i32, i32, i32) {
    %c0_i32 = arith.constant 0 : i32
    %c0_i32_0 = arith.constant 0 : i32
    %c0_i32_1 = arith.constant 0 : i32
    %c0_i32_2 = arith.constant 0 : i32
    return %c0_i32, %c0_i32_0, %c0_i32_1 : i32, i32, i32
  }
  func.func @transform_2(%arg0: i32, %arg1: i32) -> (i32, i32) {
    %c0_i32 = arith.constant 0 : i32
    %c0_i32_0 = arith.constant 0 : i32
    %c0_i32_1 = arith.constant 0 : i32
    return %c0_i32, %c0_i32_0 : i32, i32
  }
  func.func @transform_3(%arg0: i32, %arg1: i32) -> (i32, i32) {
    %c0_i32 = arith.constant 0 : i32
    %c0_i32_0 = arith.constant 0 : i32
    %c0_i32_1 = arith.constant 0 : i32
    return %c0_i32, %c0_i32_0 : i32, i32
  }
  func.func @transform_4(%arg0: i32, %arg1: i32) -> (i32, i32) {
    %c0_i32 = arith.constant 0 : i32
    %c0_i32_0 = arith.constant 0 : i32
    %c0_i32_1 = arith.constant 0 : i32
    return %c0_i32, %c0_i32_0 : i32, i32
  }
  func.func @transform_5(%arg0: i32, %arg1: i32) -> (i32, i32) {
    %c1_i32 = arith.constant 1 : i32
    %0 = arith.muli %arg0, %c1_i32 : i32
    %1 = arith.addi %0, %arg1 : i32
    %c0_i32 = arith.constant 0 : i32
    %c0_i32_0 = arith.constant 0 : i32
    return %1, %c0_i32 : i32, i32
  }
}

module attributes {stable_mosaic.version = 11 : i64} {
  func.func @kernel(%arg0: i32, %arg1: i32, %arg2: memref<16x128xf32, #tpu.memory_space<vmem>>, %arg3: memref<128x128xbf16, #tpu.memory_space<vmem>>, %arg4: memref<3x128xf32, #tpu.memory_space<vmem>>, %arg5: memref<16x128xbf16, #tpu.memory_space<vmem>>, %arg6: memref<1x2x128xf32, #tpu.memory_space<vmem>>) attributes {dimension_semantics = [#tpu.dimension_semantics<parallel>, #tpu.dimension_semantics<arbitrary>], iteration_bounds = array<i64: 2, 1>, scalar_prefetch = 0 : i64, scratch_operands = 0 : i64, tpu.core_type = #tpu.core_type<tc>, window_params = [{transform_indices = @transform_0, window_bounds = array<i64: 16, 128>}, {pipeline_mode = #tpu.pipeline_mode<synchronous>, transform_indices = @transform_1, window_bounds = array<i64: 128, 128>}, {pipeline_mode = #tpu.pipeline_mode<synchronous>, transform_indices = @transform_2, window_bounds = array<i64: 3, 128>}, {transform_indices = @transform_3, window_bounds = array<i64: 16, 128>}, {transform_indices = @transform_4, window_bounds = array<i64: 1, 2, 128>}]} {
    %c0_i32 = arith.constant 0 : i32
    %0 = arith.cmpi eq, %arg1, %c0_i32 : i32
    %1 = arith.extui %0 : i1 to i32
    %c0_i32_0 = arith.constant 0 : i32
    %2 = arith.cmpi ne, %1, %c0_i32_0 : i32
    scf.if %2 {
      %cst_17 = arith.constant 0.000000e+00 : f32
      %34 = vector.broadcast %cst_17 : f32 to vector<2x128xf32>
      %c0_18 = arith.constant 0 : index
      %c0_19 = arith.constant 0 : index
      %c0_20 = arith.constant 0 : index
      %35 = vector.load %arg6[%c0_18, %c0_19, %c0_20] : memref<1x2x128xf32, #tpu.memory_space<vmem>>, vector<1x2x128xf32>
      %36 = vector.shape_cast %35 : vector<1x2x128xf32> to vector<2x128xf32>
      %37 = vector.shape_cast %34 : vector<2x128xf32> to vector<1x2x128xf32>
      tpu.vector_store %arg6[%c0_18, %c0_19, %c0_20], %37 {strides = array<i32>} : memref<1x2x128xf32, #tpu.memory_space<vmem>>, vector<1x2x128xf32>,
    } else {
    }
    %c0 = arith.constant 0 : index
    %c0_1 = arith.constant 0 : index
    %3 = vector.load %arg2[%c0, %c0_1] : memref<16x128xf32, #tpu.memory_space<vmem>>, vector<16x128xf32>
    %4 = arith.truncf %3 : vector<16x128xf32> to vector<16x128xbf16>
    %c0_2 = arith.constant 0 : index
    %c0_3 = arith.constant 0 : index
    %5 = vector.load %arg3[%c0_2, %c0_3] : memref<128x128xbf16, #tpu.memory_space<vmem>>, vector<128x128xbf16>
    %cst = arith.constant dense<0.000000e+00> : vector<16x128xf32>
    %6 = tpu.matmul %4, %5, %cst {dimension_numbers = #tpu.dot_dimension_numbers<[1], [0], [0], [1], [0, 0, 1, 1], [], []>} : vector<16x128xbf16>, vector<128x128xbf16>, vector<16x128xf32> -> vector<16x128xf32>
    %c0_4 = arith.constant 0 : index
    %c0_5 = arith.constant 0 : index
    %7 = vector.load %arg4[%c0_4, %c0_5] : memref<3x128xf32, #tpu.memory_space<vmem>>, vector<1x128xf32>
    %8 = vector.broadcast %7 : vector<1x128xf32> to vector<16x128xf32>
    %9 = arith.addf %6, %8 : vector<16x128xf32>
    %cst_6 = arith.constant 0.000000e+00 : f32
    %10 = vector.broadcast %cst_6 : f32 to vector<16x128xf32>
    %11 = arith.maximumf %9, %10 : vector<16x128xf32>
    %c1_i32 = arith.constant 1 : i32
    %12 = arith.muli %arg0, %c1_i32 : i32
    %13 = arith.addi %12, %arg1 : i32
    %c16_i32 = arith.constant 16 : i32
    %14 = arith.muli %13, %c16_i32 : i32
    %15 = tpu.iota {dimensions = array<i32: 1>} : vector<1x16xi32>
    %16 = vector.broadcast %14 : i32 to vector<1x16xi32>
    %17 = arith.addi %15, %16 : vector<1x16xi32>
    %c8_i32 = arith.constant 8 : i32
    %18 = vector.broadcast %c8_i32 : i32 to vector<1x16xi32>
    %19 = arith.cmpi slt, %17, %18 : vector<1x16xi32>
    %20 = arith.extui %19 : vector<1x16xi1> to vector<1x16xi32>
    %21 = arith.sitofp %20 : vector<1x16xi32> to vector<1x16xf32>
    %cst_7 = arith.constant dense<0.000000e+00> : vector<1x128xf32>
    %22 = tpu.matmul %21, %11, %cst_7 {dimension_numbers = #tpu.dot_dimension_numbers<[1], [0], [0], [1], [0, 0, 1, 1], [], []>} : vector<1x16xf32>, vector<16x128xf32>, vector<1x128xf32> -> vector<1x128xf32>
    %23 = arith.mulf %11, %11 : vector<16x128xf32>
    %cst_8 = arith.constant dense<0.000000e+00> : vector<1x128xf32>
    %24 = tpu.matmul %21, %23, %cst_8 {dimension_numbers = #tpu.dot_dimension_numbers<[1], [0], [0], [1], [0, 0, 1, 1], [], []>} : vector<1x16xf32>, vector<16x128xf32>, vector<1x128xf32> -> vector<1x128xf32>
    %c0_9 = arith.constant 0 : index
    %c0_10 = arith.constant 0 : index
    %c0_11 = arith.constant 0 : index
    %25 = vector.load %arg6[%c0_9, %c0_10, %c0_11] : memref<1x2x128xf32, #tpu.memory_space<vmem>>, vector<1x2x128xf32>
    %26 = vector.shape_cast %25 : vector<1x2x128xf32> to vector<2x128xf32>
    %27 = tpu.concatenate %22, %24 in 0 : vector<1x128xf32>, vector<1x128xf32> -> vector<2x128xf32>
    %28 = arith.addf %26, %27 : vector<2x128xf32>
    %c0_12 = arith.constant 0 : index
    %c0_13 = arith.constant 0 : index
    %c0_14 = arith.constant 0 : index
    %29 = vector.load %arg6[%c0_12, %c0_13, %c0_14] : memref<1x2x128xf32, #tpu.memory_space<vmem>>, vector<1x2x128xf32>
    %30 = vector.shape_cast %29 : vector<1x2x128xf32> to vector<2x128xf32>
    %31 = vector.shape_cast %28 : vector<2x128xf32> to vector<1x2x128xf32>
    tpu.vector_store %arg6[%c0_12, %c0_13, %c0_14], %31 {strides = array<i32>} : memref<1x2x128xf32, #tpu.memory_space<vmem>>, vector<1x2x128xf32>,
    %32 = arith.truncf %11 : vector<16x128xf32> to vector<16x128xbf16>
    %c0_15 = arith.constant 0 : index
    %c0_16 = arith.constant 0 : index
    %33 = vector.load %arg5[%c0_15, %c0_16] : memref<16x128xbf16, #tpu.memory_space<vmem>>, vector<16x128xbf16>
    tpu.vector_store %arg5[%c0_15, %c0_16], %32 {strides = array<i32>} : memref<16x128xbf16, #tpu.memory_space<vmem>>, vector<16x128xbf16>,
    return
  }
  func.func @transform_0(%arg0: i32, %arg1: i32) -> (i32, i32) {
    %c1_i32 = arith.constant 1 : i32
    %0 = arith.muli %arg0, %c1_i32 : i32
    %1 = arith.addi %0, %arg1 : i32
    %c0_i32 = arith.constant 0 : i32
    %c0_i32_0 = arith.constant 0 : i32
    return %1, %c0_i32 : i32, i32
  }
  func.func @transform_1(%arg0: i32, %arg1: i32) -> (i32, i32) {
    %c0_i32 = arith.constant 0 : i32
    %c0_i32_0 = arith.constant 0 : i32
    %c0_i32_1 = arith.constant 0 : i32
    return %c0_i32, %c0_i32_0 : i32, i32
  }
  func.func @transform_2(%arg0: i32, %arg1: i32) -> (i32, i32) {
    %c0_i32 = arith.constant 0 : i32
    %c0_i32_0 = arith.constant 0 : i32
    %c0_i32_1 = arith.constant 0 : i32
    return %c0_i32, %c0_i32_0 : i32, i32
  }
  func.func @transform_3(%arg0: i32, %arg1: i32) -> (i32, i32) {
    %c1_i32 = arith.constant 1 : i32
    %0 = arith.muli %arg0, %c1_i32 : i32
    %1 = arith.addi %0, %arg1 : i32
    %c0_i32 = arith.constant 0 : i32
    %c0_i32_0 = arith.constant 0 : i32
    return %1, %c0_i32 : i32, i32
  }
  func.func @transform_4(%arg0: i32, %arg1: i32) -> (i32, i32, i32) {
    %c0_i32 = arith.constant 0 : i32
    %c0_i32_0 = arith.constant 0 : i32
    %c0_i32_1 = arith.constant 0 : i32
    return %arg0, %c0_i32, %c0_i32_0 : i32, i32, i32
  }
}

module attributes {stable_mosaic.version = 11 : i64} {
  func.func @kernel(%arg0: i32, %arg1: i32, %arg2: memref<16x128xbf16, #tpu.memory_space<vmem>>, %arg3: memref<2x2x128xf32, #tpu.memory_space<vmem>>, %arg4: memref<3x128xf32, #tpu.memory_space<vmem>>, %arg5: memref<128x128xbf16, #tpu.memory_space<vmem>>, %arg6: memref<3x128xf32, #tpu.memory_space<vmem>>, %arg7: memref<16x128xbf16, #tpu.memory_space<vmem>>, %arg8: memref<1x2x128xf32, #tpu.memory_space<vmem>>) attributes {dimension_semantics = [#tpu.dimension_semantics<parallel>, #tpu.dimension_semantics<arbitrary>], iteration_bounds = array<i64: 2, 1>, scalar_prefetch = 0 : i64, scratch_operands = 0 : i64, tpu.core_type = #tpu.core_type<tc>, window_params = [{transform_indices = @transform_0, window_bounds = array<i64: 16, 128>}, {pipeline_mode = #tpu.pipeline_mode<synchronous>, transform_indices = @transform_1, window_bounds = array<i64: 2, 2, 128>}, {pipeline_mode = #tpu.pipeline_mode<synchronous>, transform_indices = @transform_2, window_bounds = array<i64: 3, 128>}, {pipeline_mode = #tpu.pipeline_mode<synchronous>, transform_indices = @transform_3, window_bounds = array<i64: 128, 128>}, {pipeline_mode = #tpu.pipeline_mode<synchronous>, transform_indices = @transform_4, window_bounds = array<i64: 3, 128>}, {transform_indices = @transform_5, window_bounds = array<i64: 16, 128>}, {transform_indices = @transform_6, window_bounds = array<i64: 1, 2, 128>}]} {
    %c0_i32 = arith.constant 0 : i32
    %0 = arith.cmpi eq, %arg1, %c0_i32 : i32
    %1 = arith.extui %0 : i1 to i32
    %c0_i32_0 = arith.constant 0 : i32
    %2 = arith.cmpi ne, %1, %c0_i32_0 : i32
    scf.if %2 {
      %cst_29 = arith.constant 0.000000e+00 : f32
      %62 = vector.broadcast %cst_29 : f32 to vector<2x128xf32>
      %c0_30 = arith.constant 0 : index
      %c0_31 = arith.constant 0 : index
      %c0_32 = arith.constant 0 : index
      %63 = vector.load %arg8[%c0_30, %c0_31, %c0_32] : memref<1x2x128xf32, #tpu.memory_space<vmem>>, vector<1x2x128xf32>
      %64 = vector.shape_cast %63 : vector<1x2x128xf32> to vector<2x128xf32>
      %65 = vector.shape_cast %62 : vector<2x128xf32> to vector<1x2x128xf32>
      tpu.vector_store %arg8[%c0_30, %c0_31, %c0_32], %65 {strides = array<i32>} : memref<1x2x128xf32, #tpu.memory_space<vmem>>, vector<1x2x128xf32>,
    } else {
    }
    %c0 = arith.constant 0 : index
    %c0_1 = arith.constant 0 : index
    %c0_2 = arith.constant 0 : index
    %3 = vector.load %arg3[%c0, %c0_1, %c0_2] : memref<2x2x128xf32, #tpu.memory_space<vmem>>, vector<1x2x128xf32>
    %4 = vector.shape_cast %3 : vector<1x2x128xf32> to vector<2x128xf32>
    %c1 = arith.constant 1 : index
    %c0_3 = arith.constant 0 : index
    %c0_4 = arith.constant 0 : index
    %5 = vector.load %arg3[%c1, %c0_3, %c0_4] : memref<2x2x128xf32, #tpu.memory_space<vmem>>, vector<1x2x128xf32>
    %6 = vector.shape_cast %5 : vector<1x2x128xf32> to vector<2x128xf32>
    %7 = arith.addf %4, %6 : vector<2x128xf32>
    %8 = vector.extract_strided_slice %7 {offsets = [0, 0], sizes = [1, 128], strides = [1, 1]} : vector<2x128xf32> to vector<1x128xf32>
    %cst = arith.constant 1.250000e-01 : f32
    %9 = vector.broadcast %cst : f32 to vector<1x128xf32>
    %10 = arith.mulf %8, %9 : vector<1x128xf32>
    %11 = vector.extract_strided_slice %7 {offsets = [1, 0], sizes = [1, 128], strides = [1, 1]} : vector<2x128xf32> to vector<1x128xf32>
    %cst_5 = arith.constant 1.250000e-01 : f32
    %12 = vector.broadcast %cst_5 : f32 to vector<1x128xf32>
    %13 = arith.mulf %11, %12 : vector<1x128xf32>
    %14 = arith.mulf %10, %10 : vector<1x128xf32>
    %15 = arith.subf %13, %14 : vector<1x128xf32>
    %cst_6 = arith.constant 0.000000e+00 : f32
    %16 = vector.broadcast %cst_6 : f32 to vector<1x128xf32>
    %17 = arith.maximumf %15, %16 : vector<1x128xf32>
    %c1_7 = arith.constant 1 : index
    %c0_8 = arith.constant 0 : index
    %18 = vector.load %arg4[%c1_7, %c0_8] : memref<3x128xf32, #tpu.memory_space<vmem>>, vector<1x128xf32>
    %cst_9 = arith.constant 9.99999974E-6 : f32
    %19 = vector.broadcast %cst_9 : f32 to vector<1x128xf32>
    %20 = arith.addf %17, %19 : vector<1x128xf32>
    %21 = math.rsqrt %20 : vector<1x128xf32>
    %22 = arith.mulf %18, %21 : vector<1x128xf32>
    %c2 = arith.constant 2 : index
    %c0_10 = arith.constant 0 : index
    %23 = vector.load %arg4[%c2, %c0_10] : memref<3x128xf32, #tpu.memory_space<vmem>>, vector<1x128xf32>
    %24 = arith.mulf %10, %22 : vector<1x128xf32>
    %25 = arith.subf %23, %24 : vector<1x128xf32>
    %c0_11 = arith.constant 0 : index
    %c0_12 = arith.constant 0 : index
    %26 = vector.load %arg2[%c0_11, %c0_12] : memref<16x128xbf16, #tpu.memory_space<vmem>>, vector<16x128xbf16>
    %27 = arith.extf %26 : vector<16x128xbf16> to vector<16x128xf32>
    %28 = vector.broadcast %22 : vector<1x128xf32> to vector<16x128xf32>
    %29 = arith.mulf %27, %28 : vector<16x128xf32>
    %30 = vector.broadcast %25 : vector<1x128xf32> to vector<16x128xf32>
    %31 = arith.addf %29, %30 : vector<16x128xf32>
    %32 = arith.truncf %31 : vector<16x128xf32> to vector<16x128xbf16>
    %c0_13 = arith.constant 0 : index
    %c0_14 = arith.constant 0 : index
    %33 = vector.load %arg5[%c0_13, %c0_14] : memref<128x128xbf16, #tpu.memory_space<vmem>>, vector<128x128xbf16>
    %cst_15 = arith.constant dense<0.000000e+00> : vector<16x128xf32>
    %34 = tpu.matmul %32, %33, %cst_15 {dimension_numbers = #tpu.dot_dimension_numbers<[1], [0], [0], [1], [0, 0, 1, 1], [], []>} : vector<16x128xbf16>, vector<128x128xbf16>, vector<16x128xf32> -> vector<16x128xf32>
    %c0_16 = arith.constant 0 : index
    %c0_17 = arith.constant 0 : index
    %35 = vector.load %arg6[%c0_16, %c0_17] : memref<3x128xf32, #tpu.memory_space<vmem>>, vector<1x128xf32>
    %36 = vector.broadcast %35 : vector<1x128xf32> to vector<16x128xf32>
    %37 = arith.addf %34, %36 : vector<16x128xf32>
    %cst_18 = arith.constant 0.000000e+00 : f32
    %38 = vector.broadcast %cst_18 : f32 to vector<16x128xf32>
    %39 = arith.maximumf %37, %38 : vector<16x128xf32>
    %c1_i32 = arith.constant 1 : i32
    %40 = arith.muli %arg0, %c1_i32 : i32
    %41 = arith.addi %40, %arg1 : i32
    %c16_i32 = arith.constant 16 : i32
    %42 = arith.muli %41, %c16_i32 : i32
    %43 = tpu.iota {dimensions = array<i32: 1>} : vector<1x16xi32>
    %44 = vector.broadcast %42 : i32 to vector<1x16xi32>
    %45 = arith.addi %43, %44 : vector<1x16xi32>
    %c8_i32 = arith.constant 8 : i32
    %46 = vector.broadcast %c8_i32 : i32 to vector<1x16xi32>
    %47 = arith.cmpi slt, %45, %46 : vector<1x16xi32>
    %48 = arith.extui %47 : vector<1x16xi1> to vector<1x16xi32>
    %49 = arith.sitofp %48 : vector<1x16xi32> to vector<1x16xf32>
    %cst_19 = arith.constant dense<0.000000e+00> : vector<1x128xf32>
    %50 = tpu.matmul %49, %39, %cst_19 {dimension_numbers = #tpu.dot_dimension_numbers<[1], [0], [0], [1], [0, 0, 1, 1], [], []>} : vector<1x16xf32>, vector<16x128xf32>, vector<1x128xf32> -> vector<1x128xf32>
    %51 = arith.mulf %39, %39 : vector<16x128xf32>
    %cst_20 = arith.constant dense<0.000000e+00> : vector<1x128xf32>
    %52 = tpu.matmul %49, %51, %cst_20 {dimension_numbers = #tpu.dot_dimension_numbers<[1], [0], [0], [1], [0, 0, 1, 1], [], []>} : vector<1x16xf32>, vector<16x128xf32>, vector<1x128xf32> -> vector<1x128xf32>
    %c0_21 = arith.constant 0 : index
    %c0_22 = arith.constant 0 : index
    %c0_23 = arith.constant 0 : index
    %53 = vector.load %arg8[%c0_21, %c0_22, %c0_23] : memref<1x2x128xf32, #tpu.memory_space<vmem>>, vector<1x2x128xf32>
    %54 = vector.shape_cast %53 : vector<1x2x128xf32> to vector<2x128xf32>
    %55 = tpu.concatenate %50, %52 in 0 : vector<1x128xf32>, vector<1x128xf32> -> vector<2x128xf32>
    %56 = arith.addf %54, %55 : vector<2x128xf32>
    %c0_24 = arith.constant 0 : index
    %c0_25 = arith.constant 0 : index
    %c0_26 = arith.constant 0 : index
    %57 = vector.load %arg8[%c0_24, %c0_25, %c0_26] : memref<1x2x128xf32, #tpu.memory_space<vmem>>, vector<1x2x128xf32>
    %58 = vector.shape_cast %57 : vector<1x2x128xf32> to vector<2x128xf32>
    %59 = vector.shape_cast %56 : vector<2x128xf32> to vector<1x2x128xf32>
    tpu.vector_store %arg8[%c0_24, %c0_25, %c0_26], %59 {strides = array<i32>} : memref<1x2x128xf32, #tpu.memory_space<vmem>>, vector<1x2x128xf32>,
    %60 = arith.truncf %39 : vector<16x128xf32> to vector<16x128xbf16>
    %c0_27 = arith.constant 0 : index
    %c0_28 = arith.constant 0 : index
    %61 = vector.load %arg7[%c0_27, %c0_28] : memref<16x128xbf16, #tpu.memory_space<vmem>>, vector<16x128xbf16>
    tpu.vector_store %arg7[%c0_27, %c0_28], %60 {strides = array<i32>} : memref<16x128xbf16, #tpu.memory_space<vmem>>, vector<16x128xbf16>,
    return
  }
  func.func @transform_0(%arg0: i32, %arg1: i32) -> (i32, i32) {
    %c1_i32 = arith.constant 1 : i32
    %0 = arith.muli %arg0, %c1_i32 : i32
    %1 = arith.addi %0, %arg1 : i32
    %c0_i32 = arith.constant 0 : i32
    %c0_i32_0 = arith.constant 0 : i32
    return %1, %c0_i32 : i32, i32
  }
  func.func @transform_1(%arg0: i32, %arg1: i32) -> (i32, i32, i32) {
    %c0_i32 = arith.constant 0 : i32
    %c0_i32_0 = arith.constant 0 : i32
    %c0_i32_1 = arith.constant 0 : i32
    %c0_i32_2 = arith.constant 0 : i32
    return %c0_i32, %c0_i32_0, %c0_i32_1 : i32, i32, i32
  }
  func.func @transform_2(%arg0: i32, %arg1: i32) -> (i32, i32) {
    %c0_i32 = arith.constant 0 : i32
    %c0_i32_0 = arith.constant 0 : i32
    %c0_i32_1 = arith.constant 0 : i32
    return %c0_i32, %c0_i32_0 : i32, i32
  }
  func.func @transform_3(%arg0: i32, %arg1: i32) -> (i32, i32) {
    %c0_i32 = arith.constant 0 : i32
    %c0_i32_0 = arith.constant 0 : i32
    %c0_i32_1 = arith.constant 0 : i32
    return %c0_i32, %c0_i32_0 : i32, i32
  }
  func.func @transform_4(%arg0: i32, %arg1: i32) -> (i32, i32) {
    %c0_i32 = arith.constant 0 : i32
    %c0_i32_0 = arith.constant 0 : i32
    %c0_i32_1 = arith.constant 0 : i32
    return %c0_i32, %c0_i32_0 : i32, i32
  }
  func.func @transform_5(%arg0: i32, %arg1: i32) -> (i32, i32) {
    %c1_i32 = arith.constant 1 : i32
    %0 = arith.muli %arg0, %c1_i32 : i32
    %1 = arith.addi %0, %arg1 : i32
    %c0_i32 = arith.constant 0 : i32
    %c0_i32_0 = arith.constant 0 : i32
    return %1, %c0_i32 : i32, i32
  }
  func.func @transform_6(%arg0: i32, %arg1: i32) -> (i32, i32, i32) {
    %c0_i32 = arith.constant 0 : i32
    %c0_i32_0 = arith.constant 0 : i32
    %c0_i32_1 = arith.constant 0 : i32
    return %arg0, %c0_i32, %c0_i32_0 : i32, i32, i32
  }
}

</mosaic_0001>

<bundles_post_ra>
// kernel: dnn_pseudo_p_forward.5
= control target key start
LH: loop header
LB: loop body
LE: loop exit
PB: predicated region body
PF: predicated region fallthrough
CT: control target
= control target key end

     0   :  { %s627_s18 = smov 0   ;;  %s629_s19 = smov 0   ;;  %s706_s0 = inlined_call_operand.vmem [shape: bf16[32,128], index: 0, kind: input, shape index: {}]   ;;  %s707_s1 = inlined_call_operand.vmem [shape: f32[2,2,128], index: 1, kind: input, shape index: {}]   ;;  %s708_s2 = inlined_call_operand.vmem [shape: f32[3,128], index: 2, kind: input, shape index: {}]   ;;  %s709_s3 = inlined_call_operand.vmem [shape: bf16[128,128], index: 3, kind: input, shape index: {}]   ;;  %s710_s4 = inlined_call_operand.vmem [shape: f32[1,128], index: 4, kind: input, shape index: {}]   ;;  %s711_s5 = inlined_call_operand.vmem [shape: f32[32,128], index: 5, kind: output, shape index: {}]  }
   0x1   :  { %s631_s20 = smov 0  }
   0x2 LB: > { %s27_s21 = sadd.s32 1, %s589_s19  ;;  %p481_p0 = scmp.ge.s32.totalorder %s593_s20, 1  ;;  %s593_s20 = sphi %s631_s20, %s15_s20   ;;  %s589_s19 = sphi %s629_s19, %s713_s19   ;;  %s585_s18 = sphi %s627_s18, %s712_s18  }
   0x3   : > { %p29_p1 = scmp.ge.s32.totalorder %s27_s21, 2  ;;  %p206_p2 = scmp.lt.s32.totalorder %s593_s20, 3 }
   0x5   : > { %s715_s21 = smov (%p29_p1, %s27_s21), 0  ;;  %p207_p3 = pnand %p481_p0, %p206_p2 }
   0x6   : > { %v557_v0 = vld [vmem:[%s709_s3] sm:$0xff] (!%p207_p3)   ;;  %v595_v1 = vmov (!%p207_p3), 0.0   ;;  %v558_v2 = vld [vmem:[%s709_s3 + $0x8] sm:$0xff] (!%p207_p3)   ;;  %vm596_vm0 = vmmov (!%p207_p3), 0   ;;  %v559_v3 = vld [vmem:[%s709_s3 + $0x10] sm:$0xff] (!%p207_p3)   ;;  %s482_s11 = sshll.u32 (!%p207_p3), %s585_s18, 1  ;;  %v278_v18 = vlaneseq (!%p207_p3) }
   0x7   : > { %210 = sbr.rel (%p207_p3) target bundleno = 277 (0x115), region = 40  ;;  %511 = vmatprep.subr.bf16.mxu0 (!%p207_p3), %v595_v1  ;;  %527 = vmatprep.mubr.msk.bf16.mxu0 (!%p207_p3), %vm596_vm0, %v595_v1  ;;  %v253_v4 = vld [vmem:[%s707_s1] sm:$0x3] (!%p207_p3)  ;;  %v486_v5 = vld [vmem:[%s707_s1 + $0x2] sm:$0x3] (!%p207_p3)  ;;  %v560_v7 = vld [vmem:[%s709_s3 + $0x18] sm:$0xff] (!%p207_p3)  }
   0x8   : > { %512 = vmatpush3.bf16.msra.mxu0 (!%p207_p3), %v557_v0  ;;  %v256_v6 = vadd.f32 (!%p207_p3), %v486_v5, %v253_v4  ;;  %v561_v10 = vld [vmem:[%s709_s3 + $0x20] sm:$0xff] (!%p207_p3)   ;;  %v562_v13 = vld [vmem:[%s709_s3 + $0x28] sm:$0xff] (!%p207_p3)   ;;  %p238_p4 = scmp.lt.s32.totalorder (!%p207_p3), %s482_s11, 3  ;;  %v563_v16 = vld [vmem:[%s709_s3 + $0x30] sm:$0xff] (!%p207_p3)   ;;  %v279_v19 = vshrl.u32 (!%p207_p3), %v278_v18, 7 }
   0x9   : > { %513 = vmatprep.subr.bf16.mxu0 (!%p207_p3), %v595_v1  ;;  %v564_v17 = vld [vmem:[%s709_s3 + $0x38] sm:$0xff] (!%p207_p3)   ;;  %v264_v21 = vld [vmem:[%s708_s2 + $0x1] sm:$0x1] (!%p207_p3)  ;;  %v271_v28 = vld [vmem:[%s708_s2 + $0x2] sm:$0x1] (!%p207_p3) }
   0xa   : > { %v257_v8 = vmul.f32 (!%p207_p3), 0.125, %v256_v6  ;;  %v280_v24 = vsub.s32 (!%p207_p3), 0, %v279_v19  ;;  %v487_v38 = vld [vmem:[%s710_s4] ss:$0 sm:$0xff] (!%p207_p3) }
   0xc   : > { %514 = vmatpush3.bf16.msra.mxu0 (!%p207_p3), %v558_v2  ;;  %v258_v9 = vmul.f32 (!%p207_p3), %v257_v8, %v257_v8 }
   0xd   : > { %515 = vmatprep.subr.bf16.mxu0 (!%p207_p3), %v595_v1 }
   0xe   : > { %v260_v11 = vrot.slane %v258_v9, 7  ;;  %s717_s11 = smov (!%p238_p4, %s482_s11), 3 }
   0xf   : > { %s483_s18 = sshll.u32 %s717_s11, 2  ;;  %s485_s6 = sshll.u32 %s717_s11, 3 }
  0x10   : > { %516 = vmatpush3.bf16.msra.mxu0 %v559_v3  ;;  %v262_v12 = vsub.f32 %v257_v8, %v260_v11  ;;  %s241_s24 = scalar_lea.vmem %s706_s0, %s483_s18  ;;  %s249_s9 = scalar_lea.vmem %s711_s5, %s485_s6 }
  0x11   : > { %517 = vmatprep.subr.bf16.mxu0 %v595_v1  ;;  %v499_v22 = vld [vmem:[%s241_s24] sm:$0xff]  }
  0x12   : > { %v263_v14 = vmax.f32 %v262_v12, 0.0  ;;  %v500_v26 = vunpack.c.l.bf16 %v499_v22  ;;  %v501_v27 = vunpack.c.h.bf16 %v499_v22 }
  0x14   : > { %518 = vmatpush3.bf16.msra.mxu0 %v560_v7  ;;  %v265_v15 = vadd.f32 1e-05, %v263_v14 }
  0x15   : > { %519 = vmatprep.subr.bf16.mxu0 %v595_v1 }
  0x16   : > { %565 = vrsqrt.f32 %v265_v15 }
  0x18   : > { %520 = vmatpush3.bf16.msra.mxu0 %v561_v10 }
  0x19   : > { %521 = vmatprep.subr.bf16.mxu0 %v595_v1 }
  0x1c   : > { %522 = vmatpush3.bf16.msra.mxu0 %v562_v13 }
  0x1d   : > { %523 = vmatprep.subr.bf16.mxu0 %v595_v1 }
  0x20   : > { %524 = vmatpush3.bf16.msra.mxu0 %v563_v16  ;;  %v566_v20 = vpop.eup %565 }
  0x21   : > { %525 = vmatprep.subr.bf16.mxu0 %v595_v1  ;;  %v268_v23 = vrot.slane %v566_v20, 1 }
  0x23   : > { %v270_v25 = vmul.f32 %v268_v23, %v264_v21 }
  0x24   : > { %526 = vmatpush3.bf16.msra.mxu0 %v564_v17 }
  0x25   : > { %v272_v29 = vmul.f32 %v270_v25, %v257_v8  ;;  %v281_v30 = vrot.slane %v270_v25, %v280_v24 }
  0x27   : > { %v273_v31 = vsub.f32 %v271_v28, %v272_v29  ;;  %v282_v32 = vmul.f32 %v500_v26, %v281_v30  ;;  %v283_v33 = vmul.f32 %v501_v27, %v281_v30 }
  0x29   : > { %v287_v34 = vrot.slane %v273_v31, %v280_v24 }
  0x2b   : > { %v288_v35 = vadd.f32 %v287_v34, %v282_v32  ;;  %v289_v36 = vadd.f32 %v287_v34, %v283_v33 }
  0x2d   : > { %v290_v37 = vpack.c.bf16 %v289_v36, %v288_v35 }
  0x2f   : > { %528 = vmatmul.mubr.bf16.vlgmr.msra.gmra.mrb[0].mxu0 %v290_v37 }
 0x102   : > { %v396_v39 = vpop.f32.mrb[0].mxu0 }
 0x103   : > { %v397_v40 = vadd.f32 %v487_v38, %v396_v39  ;;  %v529_v41 = vpop.f32.mrb[1].mxu0 }
 0x104   : > { %v399_v42 = vpop.f32.mrb[2].mxu0 }
 0x105   : > { %v403_v43 = vmul.f32 1.442695, %v397_v40  ;;  %v400_v44 = vadd.f32 %v487_v38, %v399_v42  ;;  %v530_v45 = vpop.f32.mrb[3].mxu0 }
 0x107   : > { %567 = vpow2.f32 %v403_v43  ;;  %v405_v46 = vmul.f32 1.442695, %v400_v44 }
 0x109   : > { %569 = vpow2.f32 %v405_v46 }
 0x111   : > { %v568_v47 = vpop.eup %567 }
 0x112   : > { %407 = vst [vmem:[%s249_s9] sm:$0xff] %v568_v47 }
 0x113   : > { %v570_v48 = vpop.eup %569 }
 0x114   : > { %408 = vst [vmem:[%s249_s9 + $0x8] sm:$0xff] %v570_v48 }
 0x115 PF: > { %s15_s20 = sadd.s32 1, %s593_s20   ;;  %s712_s18 = smov %s589_s19 }
 0x116   : > { %p12_p5 = scmp.ge.s32.totalorder %s15_s20, 4   ;;  %s713_s19 = smov %s715_s21 }
 0x118   :  { %14 = sbr.rel (!%p12_p5) target bundleno = 2 (0x2), region = 71 }

// kernel: dnn_pseudo_p_forward.3
= control target key start
LH: loop header
LB: loop body
LE: loop exit
PB: predicated region body
PF: predicated region fallthrough
CT: control target
= control target key end

     0   :  { %10 = vsyncpa [#allocation3], 0  ;;  %s882_s15 = smov 0   ;;  %s884_s16 = smov 0   ;;  %s986_s0 = inlined_call_operand.vmem [shape: f32[32,128], index: 0, kind: input, shape index: {}]   ;;  %s987_s1 = inlined_call_operand.hbm [shape: bf16[128,128], index: 1, kind: input, shape index: {}]   ;;  %s988_s2 = inlined_call_operand.vmem [shape: f32[3,128], index: 2, kind: input, shape index: {}]   ;;  %s989_s3 = inlined_call_operand.vmem [shape: bf16[32,128], index: 3, kind: output, shape index: {0}]   ;;  %s990_s4 = inlined_call_operand.vmem [shape: f32[2,2,128], index: 4, kind: output, shape index: {1}]  }
   0x1   :  { %s886_s17 = smov 0  }
   0x2 LB: > { %s656_s18 = sadd.s32 4294967295, %s849_s17   ;;  %s28_s19 = sadd.s32 1, %s845_s16  ;;  %s849_s17 = sphi %s886_s17, %s16_s17   ;;  %s845_s16 = sphi %s884_s16, %s1000_s16   ;;  %s841_s15 = sphi %s882_s15, %s999_s15  }
   0x3   : > { %p30_p0 = scmp.ge.s32.totalorder %s28_s19, 2  ;;  %p658_p1 = scmp.ge.s32.totalorder %s849_s17, 1 }
   0x4   : > { %p157_p2 = scmp.lt.s32.totalorder %s849_s17, 3  ;;  %p907_p4 = scmp.eq.s32.totalorder %s656_s18, 0 }
   0x5   : > { %s1002_s19 = smov (%p30_p0, %s28_s19), 0  ;;  %s851_s22 = smov [#allocation2]  }
   0x6   : > { %p903_p3 = pnand %p658_p1, %p157_p2  ;;  %s169_s23 = sshll.u32 %s851_s22, 4  ;;  %s170_s23 = int_to_ptr.vmem [resolvable:$true] %s169_s23 }
   0x7   : > { %s995_s21 = scalar_select %p907_p4, 1, 0 }
   0x8   : > { %s994_s20 = scalar_select %p903_p3, 1, 0 }
   0x9   : > { %p751_p5 = pneg %p903_p3  ;;  %s795_s27 = scalar_lea.hbm %s987_s1, 1024 }
   0xa   : > { %p796_p7 = scmp.ne.s32.totalorder %s987_s1, %s795_s27  ;;  %p802_p11 = scmp.lt.u32.totalorder %s795_s27, %s987_s1 }
   0xb   : > { %p915_p6 = pnand %p907_p4, %p751_p5 }
   0xd   : > { %p797_p8 = pneg %p915_p6 }
   0xf   : > { %p798_p9 = pnand %p797_p8, %p796_p7 }
  0x11   : > { %p799_p10 = pneg %p798_p9 }
  0x13   : > { %p804_p12 = pnand %p802_p11, %p799_p10 }
  0x15   : > { %807 = shalt.err (!%p804_p12)
}
  0x16   : > { %s808_s6 = scalar_lea.vmem %s170_s23, 1024  ;;  %p816_p2 = scmp.lt.s32.totalorder %s170_s23, %s170_s23 }
  0x17   : > { %p809_p13 = scmp.ne.s32.totalorder %s170_s23, %s808_s6  ;;  %p817_p5 = scmp.lt.s32.totalorder %s808_s6, %s808_s6 }
  0x19   : > { %p811_p0 = pnand %p809_p13, %p797_p8  ;;  %p818_p4 = por %p817_p5, %p816_p2 }
  0x1b   : > { %p812_p1 = pneg %p811_p0 }
  0x1d   : > { %p819_p3 = pnand %p818_p4, %p812_p1 }
  0x1f   : > { %822 = shalt.err (!%p819_p3)
}
  0x20   : > { %s852_s7 = smov 64   ;;  %s853_s8 = smov 4  }
  0x21   : > { %754 = dma.hbm_to_vmem [thread:$0]  (!%p915_p6), %s987_s1, 1024, %s170_s23, [#allocation3], %s852_s7, %s852_s7, %s853_s8  }
  0x22   : > { %p997_p7 = scmp.ne.s32.totalorder %s994_s20, 0 }
  0x23   : > { %p998_p9 = scmp.ne.s32.totalorder (!%p997_p7), %s995_s21, 0 }
  0x24   : > { %199 = sbr.rel (%p997_p7) target bundleno = 522 (0x20a), region = 32 }
  0x2b   : > { %836 = dma.done.wait (%p998_p9), [#allocation3], 1024  }
  0x2c   : > { %838 = vsyncadd (%p998_p9), [#allocation3], 4294966272  ;;  %v854_v0 = vmov 0.0   ;;  %vm855_vm0 = vmmov 0   ;;  %v787_v1 = vld [vmem:[#allocation2] sm:$0xff]   ;;  %v788_v2 = vld [vmem:[#allocation2 + $0x8] sm:$0xff]   ;;  %v374_v13 = vlaneseq }
  0x2d   : > { %707 = vmatprep.subr.bf16.mxu0 %v854_v0  ;;  %723 = vmatprep.mubr.msk.bf16.mxu0 %vm855_vm0, %v854_v0  ;;  %v789_v3 = vld [vmem:[#allocation2 + $0x10] sm:$0xff]   ;;  %s663_s11 = sshll.u32 %s841_s15, 1  ;;  %v790_v4 = vld [vmem:[#allocation2 + $0x18] sm:$0xff]   ;;  %v791_v5 = vld [vmem:[#allocation2 + $0x20] sm:$0xff]   ;;  %v856_v12 = vmov 0.0|0.0   ;;  %s677_s20 = sshll.u32 %s841_s15, 4 }
  0x2e   : > { %731 = vmatprep.mubr.msk.f32.mxu1 %vm855_vm0, %v854_v0  ;;  %708 = vmatpush3.bf16.msra.mxu0 %v787_v1  ;;  %p233_p3 = scmp.lt.s32.totalorder %s663_s11, 3  ;;  %v792_v6 = vld [vmem:[#allocation2 + $0x28] sm:$0xff]   ;;  %v793_v7 = vld [vmem:[#allocation2 + $0x30] sm:$0xff]   ;;  %v794_v8 = vld [vmem:[#allocation2 + $0x38] sm:$0xff]   ;;  %v375_v15 = vand.u32 127, %v374_v13  ;;  %v376_v16 = vstv %s677_s20  ;;  %vm381_vm2 = vcmask 130048  }
  0x2f   : > { %709 = vmatprep.subr.bf16.mxu0 %v854_v0  ;;  %741 = vmatprep.subr.bf16.mxu1 %v856_v12  ;;  %v668_v14 = vld [vmem:[%s988_s2] ss:$0 sm:$0xff]  ;;  %p247_p4 = scmp.lt.s32.totalorder %s841_s15, 1  ;;  %vm531_vm3 = vcmask 1040384  }
  0x30   : > { %s1004_s11 = smov (!%p233_p3, %s663_s11), 3  ;;  %v377_v21 = vadd.s32 %v376_v16, %v375_v15 }
  0x31   : > { %s664_s12 = sshll.u32 %s1004_s11, 3  ;;  %s666_s23 = sshll.u32 %s1004_s11, 2 }
  0x32   : > { %710 = vmatpush3.bf16.msra.mxu0 %v788_v2  ;;  %s236_s18 = scalar_lea.vmem %s986_s0, %s664_s12  ;;  %s244_s26 = scalar_lea.vmem %s989_s3, %s666_s23  ;;  %vm378_vm1 = vcmp.lt.s32.totalorder %v377_v21, 8 }
  0x33   : > { %711 = vmatprep.subr.bf16.mxu0 %v854_v0  ;;  %v257_v9 = vld [vmem:[%s236_s18] sm:$0xff]  ;;  %v258_v10 = vld [vmem:[%s236_s18 + $0x8] sm:$0xff]  ;;  %v678_v30 = vsel %vm378_vm1, 1.0, %v854_v0  ;;  %s1006_s15 = smov (!%p247_p4, %s841_s15), 1 }
  0x34   : > { %v259_v11 = vpack.c.bf16 %v258_v10, %v257_v9  ;;  %s667_s27 = sshll.u32 %s1006_s15, 1 }
  0x35   : > { %s250_s30 = scalar_lea.vmem %s990_s4, %s667_s27 }
  0x36   : > { %712 = vmatpush3.bf16.msra.mxu0 %v789_v3  ;;  %256 = vst [vmem:[%s250_s30] sm:$0x3] %v854_v0 }
  0x37   : > { %713 = vmatprep.subr.bf16.mxu0 %v854_v0 }
  0x3a   : > { %714 = vmatpush3.bf16.msra.mxu0 %v790_v4 }
  0x3b   : > { %715 = vmatprep.subr.bf16.mxu0 %v854_v0 }
  0x3d   : > { %v527_v34 = vld [vmem:[%s250_s30] sm:$0x3] }
  0x3e   : > { %716 = vmatpush3.bf16.msra.mxu0 %v791_v5 }
  0x3f   : > { %717 = vmatprep.subr.bf16.mxu0 %v854_v0 }
  0x42   : > { %718 = vmatpush3.bf16.msra.mxu0 %v792_v6 }
  0x43   : > { %719 = vmatprep.subr.bf16.mxu0 %v854_v0 }
  0x46   : > { %720 = vmatpush3.bf16.msra.mxu0 %v793_v7 }
  0x47   : > { %721 = vmatprep.subr.bf16.mxu0 %v854_v0 }
  0x4a   : > { %722 = vmatpush3.bf16.msra.mxu0 %v794_v8 }
  0x4d   : > { %724 = vmatmul.mubr.bf16.vlgmr.msra.gmra.mrb[0].mxu0 %v259_v11 }
 0x120   : > { %v363_v17 = vpop.f32.mrb[0].mxu0 }
 0x121   : > { %v364_v18 = vadd.f32 %v668_v14, %v363_v17  ;;  %v725_v19 = vpop.f32.mrb[1].mxu0 }
 0x122   : > { %v366_v20 = vpop.f32.mrb[2].mxu0 }
 0x123   : > { %v370_v22 = vmax.f32 %v364_v18, 0.0  ;;  %v367_v23 = vadd.f32 %v668_v14, %v366_v20  ;;  %v726_v24 = vpop.f32.mrb[3].mxu0 }
 0x125   : > { %v371_v25 = vmax.f32 %v367_v23, 0.0  ;;  %v455_v26 = vmul.f32 %v370_v22, %v370_v22 }
 0x127   : > { %v456_v27 = vmul.f32 %v371_v25, %v371_v25  ;;  %v742_v28 = vpack.c.bf16 %v371_v25, %v370_v22 }
 0x129   : > { %v745_v29 = vpack.c.bf16 %v456_v27, %v455_v26  ;;  %743 = vmatpush3.bf16.msra.mxu1 %v742_v28  ;;  %691 = vst [vmem:[%s244_s26] sm:$0xff] %v742_v28  }
 0x12a   : > { %744 = vmatprep.subr.bf16.mxu1 %v856_v12 }
 0x12c   : > { %732 = vmatmul.mubr.msk.f32.vlgmr.msra.gmra.mrb[0].mxu1 %vm381_vm2, %v678_v30 }
 0x12d   : > { %746 = vmatpush3.bf16.msra.mxu1 %v745_v29  ;;  %738 = vmatprep.mubr.msk.f32.mxu1 %vm855_vm0, %v854_v0 }
 0x130   : > { %739 = vmatmul.mubr.msk.f32.vlgmr.msra.gmra.mrb[2].mxu1 %vm381_vm2, %v678_v30 }
 0x1ff   : > { %v451_v31 = vpop.f32.mrb[0].mxu1 }
 0x200   : > { %v733_v32 = vpop.f32.mrb[1].mxu1 }
 0x203   : > { %v523_v33 = vpop.f32.mrb[2].mxu1 }
 0x204   : > { %v529_v35 = vrot.slane %v523_v33, 7  ;;  %v740_v36 = vpop.f32.mrb[3].mxu1 }
 0x206   : > { %v532_v37 = vsel %vm531_vm3, %v451_v31, %v529_v35 }
 0x207   : > { %v533_v38 = vadd.f32 %v532_v37, %v527_v34 }
 0x209   : > { %534 = vst [vmem:[%s250_s30] sm:$0x3] %v533_v38 }
 0x20a PF: > { %s16_s17 = sadd.s32 1, %s849_s17   ;;  %s999_s15 = smov %s845_s16 }
 0x20b   : > { %p13_p6 = scmp.ge.s32.totalorder %s16_s17, 4   ;;  %s1000_s16 = smov %s1002_s19 }
 0x20d   :  { %15 = sbr.rel (!%p13_p6) target bundleno = 2 (0x2), region = 83 }
 0x214   :  { %584 = vsyncpa [#allocation3], 1 }
 0x215   :  { %586 = vsyncpa [#allocation3 + $0x1], 1 }

// kernel: dnn_pseudo_p_forward.4
= control target key start
LH: loop header
LB: loop body
LE: loop exit
PB: predicated region body
PF: predicated region fallthrough
CT: control target
= control target key end

     0   :  { %s911_s21 = smov 0   ;;  %s913_s22 = smov 0   ;;  %s1015_s0 = inlined_call_operand.vmem [shape: bf16[32,128], index: 0, kind: input, shape index: {}]   ;;  %s1016_s1 = inlined_call_operand.vmem [shape: f32[2,2,128], index: 1, kind: input, shape index: {}]   ;;  %s1017_s2 = inlined_call_operand.vmem [shape: f32[3,128], index: 2, kind: input, shape index: {}]   ;;  %s1018_s3 = inlined_call_operand.vmem [shape: bf16[128,128], index: 3, kind: input, shape index: {}]   ;;  %s1019_s4 = inlined_call_operand.vmem [shape: f32[3,128], index: 4, kind: input, shape index: {}]   ;;  %s1020_s5 = inlined_call_operand.vmem [shape: bf16[32,128], index: 5, kind: output, shape index: {0}]   ;;  %s1021_s6 = inlined_call_operand.vmem [shape: f32[2,2,128], index: 6, kind: output, shape index: {1}]  }
   0x1   :  { %s915_s23 = smov 0  }
   0x2 LB: > { %s29_s24 = sadd.s32 1, %s867_s22  ;;  %p722_p0 = scmp.ge.s32.totalorder %s871_s23, 1  ;;  %s871_s23 = sphi %s915_s23, %s17_s23   ;;  %s867_s22 = sphi %s913_s22, %s1023_s22   ;;  %s863_s21 = sphi %s911_s21, %s1022_s21  }
   0x3   : > { %p31_p1 = scmp.ge.s32.totalorder %s29_s24, 2  ;;  %p234_p2 = scmp.lt.s32.totalorder %s871_s23, 3 }
   0x5   : > { %s1025_s24 = smov (%p31_p1, %s29_s24), 0  ;;  %p235_p3 = pnand %p722_p0, %p234_p2 }
   0x6   : > { %v839_v0 = vld [vmem:[%s1018_s3] sm:$0xff] (!%p235_p3)   ;;  %v873_v1 = vmov (!%p235_p3), 0.0   ;;  %v840_v2 = vld [vmem:[%s1018_s3 + $0x8] sm:$0xff] (!%p235_p3)   ;;  %vm874_vm0 = vmmov (!%p235_p3), 0   ;;  %v841_v3 = vld [vmem:[%s1018_s3 + $0x10] sm:$0xff] (!%p235_p3)   ;;  %s723_s15 = sshll.u32 (!%p235_p3), %s863_s21, 1  ;;  %v321_v18 = vlaneseq (!%p235_p3) }
   0x7   : > { %238 = sbr.rel (%p235_p3) target bundleno = 492 (0x1ec), region = 40  ;;  %772 = vmatprep.subr.bf16.mxu0 (!%p235_p3), %v873_v1  ;;  %788 = vmatprep.mubr.msk.bf16.mxu0 (!%p235_p3), %vm874_vm0, %v873_v1  ;;  %v296_v4 = vld [vmem:[%s1016_s1] sm:$0x3] (!%p235_p3)  ;;  %v728_v5 = vld [vmem:[%s1016_s1 + $0x2] sm:$0x3] (!%p235_p3)  ;;  %v842_v7 = vld [vmem:[%s1018_s3 + $0x18] sm:$0xff] (!%p235_p3)  }
   0x8   : > { %773 = vmatpush3.bf16.msra.mxu0 (!%p235_p3), %v839_v0  ;;  %796 = vmatprep.mubr.msk.f32.mxu1 (!%p235_p3), %vm874_vm0, %v873_v1  ;;  %v299_v6 = vadd.f32 (!%p235_p3), %v728_v5, %v296_v4  ;;  %v843_v10 = vld [vmem:[%s1018_s3 + $0x20] sm:$0xff] (!%p235_p3)   ;;  %v844_v13 = vld [vmem:[%s1018_s3 + $0x28] sm:$0xff] (!%p235_p3)   ;;  %p272_p4 = scmp.lt.s32.totalorder (!%p235_p3), %s723_s15, 3  ;;  %v845_v16 = vld [vmem:[%s1018_s3 + $0x30] sm:$0xff] (!%p235_p3)   ;;  %v322_v19 = vshrl.u32 (!%p235_p3), %v321_v18, 7  ;;  %v875_v38 = vmov (!%p235_p3), 0.0|0.0  }
   0x9   : > { %774 = vmatprep.subr.bf16.mxu0 (!%p235_p3), %v873_v1  ;;  %v846_v17 = vld [vmem:[%s1018_s3 + $0x38] sm:$0xff] (!%p235_p3)   ;;  %v307_v21 = vld [vmem:[%s1017_s2 + $0x1] sm:$0x1] (!%p235_p3)  ;;  %v314_v28 = vld [vmem:[%s1017_s2 + $0x2] sm:$0x1] (!%p235_p3)  ;;  %806 = vmatprep.subr.bf16.mxu1 (!%p235_p3), %v875_v38  ;;  %s738_s10 = sshll.u32 (!%p235_p3), %s863_s21, 4 }
   0xa   : > { %v300_v8 = vmul.f32 (!%p235_p3), 0.125, %v299_v6  ;;  %v323_v24 = vsub.s32 (!%p235_p3), 0, %v322_v19  ;;  %v729_v39 = vld [vmem:[%s1019_s4] ss:$0 sm:$0xff] (!%p235_p3)  ;;  %v449_v40 = vand.u32 (!%p235_p3), 127, %v321_v18  ;;  %v450_v41 = vstv (!%p235_p3), %s738_s10  ;;  %p286_p5 = scmp.lt.s32.totalorder (!%p235_p3), %s863_s21, 1 }
   0xb   : > { %vm455_vm2 = vcmask (!%p235_p3), 130048   ;;  %vm605_vm3 = vcmask (!%p235_p3), 1040384  }
   0xc   : > { %775 = vmatpush3.bf16.msra.mxu0 (!%p235_p3), %v840_v2  ;;  %v301_v9 = vmul.f32 (!%p235_p3), %v300_v8, %v300_v8  ;;  %v451_v46 = vadd.s32 (!%p235_p3), %v450_v41, %v449_v40 }
   0xd   : > { %776 = vmatprep.subr.bf16.mxu0 (!%p235_p3), %v873_v1 }
   0xe   : > { %v303_v11 = vrot.slane %v301_v9, 7  ;;  %s1027_s15 = smov (!%p272_p4, %s723_s15), 3  ;;  %vm452_vm1 = vcmp.lt.s32.totalorder %v451_v46, 8  ;;  %s1029_s21 = smov (!%p286_p5, %s863_s21), 1 }
   0xf   : > { %s724_s26 = sshll.u32 %s1027_s15, 2  ;;  %v739_v55 = vsel %vm452_vm1, 1.0, %v873_v1  ;;  %s727_s15 = sshll.u32 %s1029_s21, 1 }
  0x10   : > { %777 = vmatpush3.bf16.msra.mxu0 %v841_v3  ;;  %v305_v12 = vsub.f32 %v300_v8, %v303_v11  ;;  %s275_s29 = scalar_lea.vmem %s1015_s0, %s724_s26  ;;  %s283_s16 = scalar_lea.vmem %s1020_s5, %s724_s26 }
  0x11   : > { %778 = vmatprep.subr.bf16.mxu0 %v873_v1  ;;  %v749_v22 = vld [vmem:[%s275_s29] sm:$0xff]   ;;  %s289_s19 = scalar_lea.vmem %s1021_s6, %s727_s15 }
  0x12   : > { %v306_v14 = vmax.f32 %v305_v12, 0.0  ;;  %v750_v26 = vunpack.c.l.bf16 %v749_v22  ;;  %v751_v27 = vunpack.c.h.bf16 %v749_v22  ;;  %295 = vst [vmem:[%s289_s19] sm:$0x3] %v873_v1 }
  0x14   : > { %779 = vmatpush3.bf16.msra.mxu0 %v842_v7  ;;  %v308_v15 = vadd.f32 1e-05, %v306_v14 }
  0x15   : > { %780 = vmatprep.subr.bf16.mxu0 %v873_v1 }
  0x16   : > { %847 = vrsqrt.f32 %v308_v15 }
  0x18   : > { %781 = vmatpush3.bf16.msra.mxu0 %v843_v10 }
  0x19   : > { %782 = vmatprep.subr.bf16.mxu0 %v873_v1  ;;  %v601_v59 = vld [vmem:[%s289_s19] sm:$0x3] }
  0x1c   : > { %783 = vmatpush3.bf16.msra.mxu0 %v844_v13 }
  0x1d   : > { %784 = vmatprep.subr.bf16.mxu0 %v873_v1 }
  0x20   : > { %785 = vmatpush3.bf16.msra.mxu0 %v845_v16  ;;  %v848_v20 = vpop.eup %847 }
  0x21   : > { %786 = vmatprep.subr.bf16.mxu0 %v873_v1  ;;  %v311_v23 = vrot.slane %v848_v20, 1 }
  0x23   : > { %v313_v25 = vmul.f32 %v311_v23, %v307_v21 }
  0x24   : > { %787 = vmatpush3.bf16.msra.mxu0 %v846_v17 }
  0x25   : > { %v315_v29 = vmul.f32 %v313_v25, %v300_v8  ;;  %v324_v30 = vrot.slane %v313_v25, %v323_v24 }
  0x27   : > { %v316_v31 = vsub.f32 %v314_v28, %v315_v29  ;;  %v325_v32 = vmul.f32 %v750_v26, %v324_v30  ;;  %v326_v33 = vmul.f32 %v751_v27, %v324_v30 }
  0x29   : > { %v330_v34 = vrot.slane %v316_v31, %v323_v24 }
  0x2b   : > { %v331_v35 = vadd.f32 %v330_v34, %v325_v32  ;;  %v332_v36 = vadd.f32 %v330_v34, %v326_v33 }
  0x2d   : > { %v333_v37 = vpack.c.bf16 %v332_v36, %v331_v35 }
  0x2f   : > { %789 = vmatmul.mubr.bf16.vlgmr.msra.gmra.mrb[0].mxu0 %v333_v37 }
 0x102   : > { %v437_v42 = vpop.f32.mrb[0].mxu0 }
 0x103   : > { %v438_v43 = vadd.f32 %v729_v39, %v437_v42  ;;  %v790_v44 = vpop.f32.mrb[1].mxu0 }
 0x104   : > { %v440_v45 = vpop.f32.mrb[2].mxu0 }
 0x105   : > { %v444_v47 = vmax.f32 %v438_v43, 0.0  ;;  %v441_v48 = vadd.f32 %v729_v39, %v440_v45  ;;  %v791_v49 = vpop.f32.mrb[3].mxu0 }
 0x107   : > { %v445_v50 = vmax.f32 %v441_v48, 0.0  ;;  %v529_v51 = vmul.f32 %v444_v47, %v444_v47 }
 0x109   : > { %v530_v52 = vmul.f32 %v445_v50, %v445_v50  ;;  %v807_v53 = vpack.c.bf16 %v445_v50, %v444_v47 }
 0x10b   : > { %v810_v54 = vpack.c.bf16 %v530_v52, %v529_v51  ;;  %808 = vmatpush3.bf16.msra.mxu1 %v807_v53  ;;  %756 = vst [vmem:[%s283_s16] sm:$0xff] %v807_v53  }
 0x10c   : > { %809 = vmatprep.subr.bf16.mxu1 %v875_v38 }
 0x10e   : > { %797 = vmatmul.mubr.msk.f32.vlgmr.msra.gmra.mrb[0].mxu1 %vm455_vm2, %v739_v55 }
 0x10f   : > { %811 = vmatpush3.bf16.msra.mxu1 %v810_v54  ;;  %803 = vmatprep.mubr.msk.f32.mxu1 %vm874_vm0, %v873_v1 }
 0x112   : > { %804 = vmatmul.mubr.msk.f32.vlgmr.msra.gmra.mrb[2].mxu1 %vm455_vm2, %v739_v55 }
 0x1e1   : > { %v525_v56 = vpop.f32.mrb[0].mxu1 }
 0x1e2   : > { %v798_v57 = vpop.f32.mrb[1].mxu1 }
 0x1e5   : > { %v597_v58 = vpop.f32.mrb[2].mxu1 }
 0x1e6   : > { %v603_v60 = vrot.slane %v597_v58, 7  ;;  %v805_v61 = vpop.f32.mrb[3].mxu1 }
 0x1e8   : > { %v606_v62 = vsel %vm605_vm3, %v525_v56, %v603_v60 }
 0x1e9   : > { %v607_v63 = vadd.f32 %v606_v62, %v601_v59 }
 0x1eb   : > { %608 = vst [vmem:[%s289_s19] sm:$0x3] %v607_v63 }
 0x1ec PF: > { %s17_s23 = sadd.s32 1, %s871_s23   ;;  %s1022_s21 = smov %s867_s22 }
 0x1ed   : > { %p14_p6 = scmp.ge.s32.totalorder %s17_s23, 4   ;;  %s1023_s22 = smov %s1025_s24 }
 0x1ef   :  { %16 = sbr.rel (!%p14_p6) target bundleno = 2 (0x2), region = 87 }

</bundles_post_ra>
